<compile_context>
chip_gen: v6e
topology: v6e:2x2x1
jax: 0.10.0
libtpu: 0.0.40
codegen_flags: <defaults>
</compile_context>

<pallas_src>
import jax
import jax.numpy as jnp
from jax.experimental import pallas as pl
from jax.experimental.pallas import tpu as pltpu

F32_MIN = float(jnp.finfo(jnp.float32).min)


def _largest_divisor_leq(n, k):
    """Largest divisor of n that is <= k (keeps batch-block grids exact)."""
    k = max(1, min(k, n))
    for d in range(k, 0, -1):
        if n % d == 0:
            return d
    return 1


# --------------------------- attention masks ---------------------------------

def make_causal_mask(B, S, dtype=jnp.float32):
    """HF _create_4d_causal_attention_mask: batch-invariant, computed once."""
    rows = jnp.arange(S)[:, None]
    cols = jnp.arange(S)[None, :]
    causal = jnp.where(cols <= rows, 0.0, F32_MIN).astype(dtype)   # (S, S)
    # Broadcast only to honour the module's (B,1,S,S) return contract; the
    # per-batch values are identical (no recompute).
    return jnp.broadcast_to(causal[None, None], (B, 1, S, S))


def _pad_mask_kernel(attn_ref, o_ref):
    # attn_ref: (TB, 1, S) float {0,1};  o_ref: (TB, S, S) additive bias.
    TB, S, _ = o_ref.shape
    keep = attn_ref[...][:, 0, :] > 0.5                    # (TB, S)
    padrow = jnp.where(keep, 0.0, F32_MIN)                 # scalar 0.0, no zeros tensor
    # NOTE: last dim is S (<128 lanes at real scale) -> masked stores; a flat
    # (TB, S*S) layout would be lane-dense but needs an in-kernel minor-dim
    # reshape (possible Mosaic relayout), so the simple layout is kept for
    # this tiny, batch-blocked kernel.
    o_ref[...] = jnp.broadcast_to(padrow[:, None, :], (TB, S, S))


def make_pad_mask(attention_mask, *, tile_b=8):
    """HF _prepare_4d_attention_mask: (B,S){0,1} -> (B,1,S,S) additive bias."""
    B, S = attention_mask.shape
    TB = _largest_divisor_leq(B, tile_b)                   # batch-block the grid
    attn3 = attention_mask.reshape(B, 1, S).astype(jnp.float32)
    out = pl.pallas_call(
        _pad_mask_kernel,
        out_shape=jax.ShapeDtypeStruct((B, S, S), jnp.float32),
        grid=(B // TB,),
        in_specs=[pl.BlockSpec((TB, 1, S), lambda b: (b, 0, 0))],
        out_specs=pl.BlockSpec((TB, S, S), lambda b: (b, 0, 0)),
        compiler_params=pltpu.CompilerParams(dimension_semantics=("parallel",)),
    )(attn3)
    return out.reshape(B, 1, S, S)                         # free singleton insert


# ------------------------------ p_ori ----------------------------------------

def assemble_p_ori(emb, p_input, n_pro, *, tile_b=8):
    """p_ori = emb with rows 1..1+n_pro overwritten by p_input (batch-invariant).

    Implemented as an aliased partial-row write: the output shares the HBM
    buffer with `emb` (input_output_aliases={0:0}) and each grid step only
    reads/writes the first 8-sublane-aligned row window containing the prompt
    rows, so the untouched suffix rows never cross HBM again.
    """
    B, S, D = emb.shape
    n_rows = p_input.shape[0]
    assert n_rows == n_pro and 1 + n_rows <= S
    TB = _largest_divisor_leq(B, tile_b)
    ROWB = min(S, -(-(1 + n_rows) // 8) * 8)               # 8-aligned write window

    def kernel(emb_ref, pin_ref, o_ref):
        # copy the window (prefix row 0 + any rows up to ROWB) ...
        o_ref[...] = emb_ref[...]
        # ... then overwrite the prompt rows with p_input (static slice store).
        o_ref[:, 1:1 + n_rows, :] = jnp.broadcast_to(
            pin_ref[...][None].astype(o_ref.dtype), (TB, n_rows, D))

    return pl.pallas_call(
        kernel,
        out_shape=jax.ShapeDtypeStruct((B, S, D), emb.dtype),
        grid=(B // TB,),
        in_specs=[pl.BlockSpec((TB, ROWB, D), lambda b: (b, 0, 0)),
                  pl.BlockSpec((n_rows, D), lambda b: (0, 0))],   # resident param
        out_specs=pl.BlockSpec((TB, ROWB, D), lambda b: (b, 0, 0)),
        input_output_aliases={0: 0},
        compiler_params=pltpu.CompilerParams(dimension_semantics=("parallel",)),
    )(emb, p_input.astype(emb.dtype))


# ------------------------------ p_ins ----------------------------------------

def p_ins_project(feats, w, b, num_layers, *, tile_n=512,
                  mxu_dtype=jnp.bfloat16, out_dtype=jnp.float32):
    """feats: (C, L, N, D) in its ORIGINAL layout; w: (D,D) (in,out); b: (D,).

    Returns (L1, C*N, D) = feat + feat @ w + b per layer slab, L1=num_layers,
    without ever materialising the permuted/reshaped feats in HBM: the grid is
    (L1, C, N/tn) and the in_spec index_map swaps the (C, L) axes on the fly.
    """
    C, L, N, D = feats.shape
    L1 = num_layers
    assert L1 <= L
    tn = min(tile_n, N)
    Np = pl.cdiv(N, tn) * tn
    if Np != N:                                   # ragged N: pad once, slice back
        feats = jnp.pad(feats, ((0, 0), (0, 0), (0, Np - N), (0, 0)))
    w_mxu = w.astype(mxu_dtype)                   # cast resident weight once
    b2 = b.reshape(1, D).astype(jnp.float32)

    def kernel(x_ref, w_ref, b_ref, o_ref):
        x = x_ref[0, 0]                                           # (tn, D)
        prec = jax.lax.Precision.HIGHEST if mxu_dtype == jnp.float32 else None
        y = jnp.dot(x.astype(mxu_dtype), w_ref[...],              # bf16 MXU ops
                    precision=prec,
                    preferred_element_type=jnp.float32)           # f32 accumulate
        y = y + b_ref[...]
        o_ref[0, 0] = (x.astype(jnp.float32) + y).astype(o_ref.dtype)  # exact residual

    out = pl.pallas_call(
        kernel,
        out_shape=jax.ShapeDtypeStruct((L1, C, Np, D), out_dtype),
        grid=(L1, C, Np // tn),
        in_specs=[pl.BlockSpec((1, 1, tn, D), lambda l, c, n: (c, l, n, 0)),
                  pl.BlockSpec((D, D), lambda l, c, n: (0, 0)),    # resident W
                  pl.BlockSpec((1, D), lambda l, c, n: (0, 0))],   # resident bias
        out_specs=pl.BlockSpec((1, 1, tn, D), lambda l, c, n: (l, c, n, 0)),
        compiler_params=pltpu.CompilerParams(
            dimension_semantics=("parallel", "parallel", "parallel"),
            vmem_limit_bytes=32 * 1024 * 1024),   # explicit for v7x (64 MiB phys)
    )(feats, w_mxu, b2)
    if Np != N:
        out = out[:, :, :N, :]
    return out.reshape(L1, C * N, D)              # contiguous -> free


# --------------------------- forward composition -----------------------------

def my_prompt_learner_forward(token_ids, attention_mask, feats, params,
                              n_tpro, n_high, *, tile_n=512, tile_b=8,
                              mxu_dtype=jnp.bfloat16):
    """Mirrors MYPromptLearner.forward after tokenization.

    token_ids      : (B, S) int32   -- tokenizer(...)['input_ids']
    attention_mask : (B, S) {0,1}   -- tokenizer attention mask
    feats          : (C, L, N, D)   -- kept in its original layout
    Returns (p_ori, p_ins, p_uni, causal_attention_mask, attention_mask_4d).
    """
    n_pro = n_tpro + n_high
    B, S = token_ids.shape

    # Frozen CLIP text embeddings (torch.no_grad): gather + positional add in XLA.
    emb = (params["token_embedding"][token_ids]
           + params["position_embedding"][:S][None, :, :]).astype(jnp.float32)

    causal_mask = make_causal_mask(B, S)                       # computed once
    pad_mask = make_pad_mask(attention_mask, tile_b=tile_b)

    p_ori = assemble_p_ori(emb, params["p_input"].astype(jnp.float32),
                           n_pro, tile_b=tile_b)

    L1 = params["p_uni"].shape[0]                              # layers - 1
    p_ins = p_ins_project(feats, params["proj_w"], params["proj_b"], L1,
                          tile_n=tile_n, mxu_dtype=mxu_dtype)

    return p_ori, p_ins, params["p_uni"], causal_mask, pad_mask


# ----------------------------- pure-JAX reference ----------------------------

def _reference(token_ids, attention_mask, feats, params, n_tpro, n_high):
    n_pro = n_tpro + n_high
    B, S = token_ids.shape
    emb = (params["token_embedding"][token_ids]
           + params["position_embedding"][:S][None, :, :]).astype(jnp.float32)

    rows = jnp.arange(S)[:, None]
    cols = jnp.arange(S)[None, :]
    causal = jnp.where(cols <= rows, 0.0, F32_MIN)
    causal = jnp.broadcast_to(causal[None, None], (B, 1, S, S))
    pad = jnp.where(attention_mask[:, None, None, :] > 0.5, 0.0, F32_MIN)
    pad = jnp.broadcast_to(pad, (B, 1, S, S))

    prefix = emb[:, :1]
    suffix = emb[:, 1 + n_pro:]
    p_in = jnp.broadcast_to(params["p_input"][None].astype(emb.dtype),
                            (B, n_pro, emb.shape[-1]))
    p_ori = jnp.concatenate([prefix, p_in, suffix], axis=1)

    C, L, N, D = feats.shape
    feats_r = feats.transpose(1, 0, 2, 3).reshape(L, C * N, D)
    L1 = params["p_uni"].shape[0]
    outs = []
    for idx in range(L1):
        f = feats_r[idx].astype(jnp.float32)
        outs.append(f + jnp.dot(f, params["proj_w"],
                                precision=jax.lax.Precision.HIGHEST)
                    + params["proj_b"])
    p_ins = jnp.stack(outs, axis=0)
    return p_ori, p_ins, params["p_uni"], causal, pad


# ---------------------------------- main -------------------------------------

if __name__ == "__main__":
    # Small shapes consistent with the module's forward.
    N_CLS, N_DESC = 2, 2
    B = N_CLS * N_DESC        # number of prompts (classnames x descriptions)
    S = 16                    # tokenizer max_length (64 in the real module)
    D = 32                    # ctx_dim
    VOCAB = 64
    N_TPRO, N_HIGH = 2, 2
    LAYERS = 3                # text-encoder layers -> layers-1 = 2 prompt layers
    C, N = 4, 16              # feats: (c, l, n, d) with l = layers-1

    key = jax.random.PRNGKey(0)
    ks = iter(jax.random.split(key, 16))

    # TODO(synk): HF tokenizer / prompt-string construction is host-side string
    # processing; simulated with deterministic token ids + padding mask.
    token_ids = jax.random.randint(next(ks), (B, S), 0, VOCAB)
    attention_mask = jnp.broadcast_to(
        (jnp.arange(S)[None, :] < 10).astype(jnp.int32), (B, S))

    params = {
        "token_embedding": jax.random.normal(next(ks), (VOCAB, D), jnp.float32) * 0.02,
        "position_embedding": jax.random.normal(next(ks), (S, D), jnp.float32) * 0.02,
        "p_input": jax.random.normal(next(ks), (N_TPRO + N_HIGH, D), jnp.float32) * 0.02,
        "p_uni": jax.random.normal(next(ks), (LAYERS - 1, N_TPRO, D), jnp.float32) * 0.02,
        # p_ins_projector weights stored (in, out): y = x @ w + b == torch x @ W.T + b
        # (transpose once at parameter-load time, not per forward).
        "proj_w": jax.random.normal(next(ks), (D, D), jnp.float32) * 0.05,
        "proj_b": jax.random.normal(next(ks), (D,), jnp.float32) * 0.01,
    }
    feats = jax.random.normal(next(ks), (C, LAYERS - 1, N, D), jnp.float32)

    fwd = jax.jit(lambda tok, am, ft, pr: my_prompt_learner_forward(
        tok, am, ft, pr, N_TPRO, N_HIGH, tile_n=512, tile_b=8))
    outs = jax.block_until_ready(fwd(token_ids, attention_mask, feats, params))

    refs = _reference(token_ids, attention_mask, feats, params, N_TPRO, N_HIGH)
    names = ("p_ori", "p_ins", "p_uni", "causal_mask", "attention_mask_4d")
    # p_ins uses bf16 MXU operands (f32 accumulate) -> relaxed tolerance there.
    tols = {"p_ins": (5e-2, 5e-2)}
    for name, got, want in zip(names, outs, refs):
        assert got.shape == want.shape, (name, got.shape, want.shape)
        atol, rtol = tols.get(name, (2e-5, 2e-5))
        assert jnp.allclose(got, want, atol=atol, rtol=rtol), f"mismatch: {name}"

    # Tight check of the GEMM path semantics with f32 MXU operands.
    p_ins_f32 = jax.block_until_ready(
        p_ins_project(feats, params["proj_w"], params["proj_b"], LAYERS - 1,
                      tile_n=512, mxu_dtype=jnp.float32))
    assert p_ins_f32.shape == refs[1].shape
    assert jnp.allclose(p_ins_f32, refs[1], atol=1e-4, rtol=1e-4), "mismatch: p_ins(f32)"

    print("KERNEL_OK")
</pallas_src>

<mosaic_0001>
module attributes {stable_mosaic.version = 11 : i64} {
  func.func @kernel(%arg0: i32, %arg1: memref<4x8x32xf32, #tpu.memory_space<vmem>>, %arg2: memref<4x32xf32, #tpu.memory_space<vmem>>, %arg3: memref<4x8x32xf32, #tpu.memory_space<vmem>>) attributes {dimension_semantics = [#tpu.dimension_semantics<parallel>], iteration_bounds = array<i64: 1>, scalar_prefetch = 0 : i64, scratch_operands = 0 : i64, tpu.core_type = #tpu.core_type<tc>, window_params = [{transform_indices = @transform_0, window_bounds = array<i64: 4, 8, 32>}, {pipeline_mode = #tpu.pipeline_mode<synchronous>, transform_indices = @transform_1, window_bounds = array<i64: 4, 32>}, {transform_indices = @transform_2, window_bounds = array<i64: 4, 8, 32>}]} {
    %c0 = arith.constant 0 : index
    %c0_0 = arith.constant 0 : index
    %c0_1 = arith.constant 0 : index
    %0 = vector.load %arg1[%c0, %c0_0, %c0_1] : memref<4x8x32xf32, #tpu.memory_space<vmem>>, vector<4x8x32xf32>
    %c0_2 = arith.constant 0 : index
    %c0_3 = arith.constant 0 : index
    %c0_4 = arith.constant 0 : index
    %1 = vector.load %arg3[%c0_2, %c0_3, %c0_4] : memref<4x8x32xf32, #tpu.memory_space<vmem>>, vector<4x8x32xf32>
    tpu.vector_store %arg3[%c0_2, %c0_3, %c0_4], %0 {strides = array<i32>} : memref<4x8x32xf32, #tpu.memory_space<vmem>>, vector<4x8x32xf32>,
    %c0_5 = arith.constant 0 : index
    %c0_6 = arith.constant 0 : index
    %2 = vector.load %arg2[%c0_5, %c0_6] : memref<4x32xf32, #tpu.memory_space<vmem>>, vector<4x32xf32>
    %3 = vector.shape_cast %2 : vector<4x32xf32> to vector<1x4x32xf32>
    %4 = vector.shape_cast %3 : vector<1x4x32xf32> to vector<1x4x32xf32>
    %5 = vector.broadcast %4 : vector<1x4x32xf32> to vector<4x4x32xf32>
    %c0_7 = arith.constant 0 : index
    %c1 = arith.constant 1 : index
    %c0_8 = arith.constant 0 : index
    %6 = vector.load %arg3[%c0_7, %c1, %c0_8] : memref<4x8x32xf32, #tpu.memory_space<vmem>>, vector<4x4x32xf32>
    tpu.vector_store %arg3[%c0_7, %c1, %c0_8], %5 {strides = array<i32>} : memref<4x8x32xf32, #tpu.memory_space<vmem>>, vector<4x4x32xf32>,
    return
  }
  func.func @transform_0(%arg0: i32) -> (i32, i32, i32) {
    %c0_i32 = arith.constant 0 : i32
    %c0_i32_0 = arith.constant 0 : i32
    %c0_i32_1 = arith.constant 0 : i32
    return %arg0, %c0_i32, %c0_i32_0 : i32, i32, i32
  }
  func.func @transform_1(%arg0: i32) -> (i32, i32) {
    %c0_i32 = arith.constant 0 : i32
    %c0_i32_0 = arith.constant 0 : i32
    %c0_i32_1 = arith.constant 0 : i32
    return %c0_i32, %c0_i32_0 : i32, i32
  }
  func.func @transform_2(%arg0: i32) -> (i32, i32, i32) {
    %c0_i32 = arith.constant 0 : i32
    %c0_i32_0 = arith.constant 0 : i32
    %c0_i32_1 = arith.constant 0 : i32
    return %arg0, %c0_i32, %c0_i32_0 : i32, i32, i32
  }
}

module attributes {stable_mosaic.version = 11 : i64} {
  func.func @kernel(%arg0: i32, %arg1: i32, %arg2: i32, %arg3: memref<1x1x16x32xf32, #tpu.memory_space<vmem>>, %arg4: memref<32x32xbf16, #tpu.memory_space<vmem>>, %arg5: memref<1x32xf32, #tpu.memory_space<vmem>>, %arg6: memref<1x1x16x32xf32, #tpu.memory_space<vmem>>) attributes {dimension_semantics = [#tpu.dimension_semantics<parallel>, #tpu.dimension_semantics<parallel>, #tpu.dimension_semantics<parallel>], iteration_bounds = array<i64: 2, 4, 1>, scalar_prefetch = 0 : i64, scratch_operands = 0 : i64, tpu.core_type = #tpu.core_type<tc>, window_params = [{transform_indices = @transform_0, window_bounds = array<i64: 1, 1, 16, 32>}, {pipeline_mode = #tpu.pipeline_mode<synchronous>, transform_indices = @transform_1, window_bounds = array<i64: 32, 32>}, {pipeline_mode = #tpu.pipeline_mode<synchronous>, transform_indices = @transform_2, window_bounds = array<i64: 1, 32>}, {transform_indices = @transform_3, window_bounds = array<i64: 1, 1, 16, 32>}]} {
    %c0 = arith.constant 0 : index
    %c0_0 = arith.constant 0 : index
    %c0_1 = arith.constant 0 : index
    %c0_2 = arith.constant 0 : index
    %0 = vector.load %arg3[%c0, %c0_0, %c0_1, %c0_2] : memref<1x1x16x32xf32, #tpu.memory_space<vmem>>, vector<1x1x16x32xf32>
    %1 = vector.shape_cast %0 : vector<1x1x16x32xf32> to vector<16x32xf32>
    %2 = arith.truncf %1 : vector<16x32xf32> to vector<16x32xbf16>
    %c0_3 = arith.constant 0 : index
    %c0_4 = arith.constant 0 : index
    %3 = vector.load %arg4[%c0_3, %c0_4] : memref<32x32xbf16, #tpu.memory_space<vmem>>, vector<32x32xbf16>
    %cst = arith.constant dense<0.000000e+00> : vector<16x32xf32>
    %4 = tpu.matmul %2, %3, %cst {dimension_numbers = #tpu.dot_dimension_numbers<[1], [0], [0], [1], [0, 0, 1, 1], [], []>} : vector<16x32xbf16>, vector<32x32xbf16>, vector<16x32xf32> -> vector<16x32xf32>
    %c0_5 = arith.constant 0 : index
    %c0_6 = arith.constant 0 : index
    %5 = vector.load %arg5[%c0_5, %c0_6] : memref<1x32xf32, #tpu.memory_space<vmem>>, vector<1x32xf32>
    %6 = vector.broadcast %5 : vector<1x32xf32> to vector<16x32xf32>
    %7 = arith.addf %4, %6 : vector<16x32xf32>
    %8 = arith.addf %1, %7 : vector<16x32xf32>
    %c0_7 = arith.constant 0 : index
    %c0_8 = arith.constant 0 : index
    %c0_9 = arith.constant 0 : index
    %c0_10 = arith.constant 0 : index
    %9 = vector.load %arg6[%c0_7, %c0_8, %c0_9, %c0_10] : memref<1x1x16x32xf32, #tpu.memory_space<vmem>>, vector<1x1x16x32xf32>
    %10 = vector.shape_cast %9 : vector<1x1x16x32xf32> to vector<16x32xf32>
    %11 = vector.shape_cast %8 : vector<16x32xf32> to vector<1x1x16x32xf32>
    tpu.vector_store %arg6[%c0_7, %c0_8, %c0_9, %c0_10], %11 {strides = array<i32>} : memref<1x1x16x32xf32, #tpu.memory_space<vmem>>, vector<1x1x16x32xf32>,
    return
  }
  func.func @transform_0(%arg0: i32, %arg1: i32, %arg2: i32) -> (i32, i32, i32, i32) {
    %c0_i32 = arith.constant 0 : i32
    %c0_i32_0 = arith.constant 0 : i32
    return %arg1, %arg0, %arg2, %c0_i32 : i32, i32, i32, i32
  }
  func.func @transform_1(%arg0: i32, %arg1: i32, %arg2: i32) -> (i32, i32) {
    %c0_i32 = arith.constant 0 : i32
    %c0_i32_0 = arith.constant 0 : i32
    %c0_i32_1 = arith.constant 0 : i32
    return %c0_i32, %c0_i32_0 : i32, i32
  }
  func.func @transform_2(%arg0: i32, %arg1: i32, %arg2: i32) -> (i32, i32) {
    %c0_i32 = arith.constant 0 : i32
    %c0_i32_0 = arith.constant 0 : i32
    %c0_i32_1 = arith.constant 0 : i32
    return %c0_i32, %c0_i32_0 : i32, i32
  }
  func.func @transform_3(%arg0: i32, %arg1: i32, %arg2: i32) -> (i32, i32, i32, i32) {
    %c0_i32 = arith.constant 0 : i32
    %c0_i32_0 = arith.constant 0 : i32
    return %arg0, %arg1, %arg2, %c0_i32 : i32, i32, i32, i32
  }
}

module attributes {stable_mosaic.version = 11 : i64} {
  func.func @_pad_mask_kernel(%arg0: i32, %arg1: memref<4x1x16xf32, #tpu.memory_space<vmem>>, %arg2: memref<4x16x16xf32, #tpu.memory_space<vmem>>) attributes {dimension_semantics = [#tpu.dimension_semantics<parallel>], iteration_bounds = array<i64: 1>, scalar_prefetch = 0 : i64, scratch_operands = 0 : i64, tpu.core_type = #tpu.core_type<tc>, window_params = [{transform_indices = @transform_0, window_bounds = array<i64: 4, 1, 16>}, {transform_indices = @transform_1, window_bounds = array<i64: 4, 16, 16>}]} {
    %c0 = arith.constant 0 : index
    %c0_0 = arith.constant 0 : index
    %c0_1 = arith.constant 0 : index
    %0 = vector.load %arg1[%c0, %c0_0, %c0_1] : memref<4x1x16xf32, #tpu.memory_space<vmem>>, vector<4x1x16xf32>
    %1 = vector.shape_cast %0 : vector<4x1x16xf32> to vector<4x16xf32>
    %cst = arith.constant 5.000000e-01 : f32
    %2 = vector.broadcast %cst : f32 to vector<4x16xf32>
    %3 = arith.cmpf ogt, %1, %2 : vector<4x16xf32>
    %cst_2 = arith.constant 0.000000e+00 : f32
    %cst_3 = arith.constant -3.40282347E+38 : f32
    %4 = vector.broadcast %cst_2 : f32 to vector<4x16xf32>
    %5 = vector.broadcast %cst_3 : f32 to vector<4x16xf32>
    %6 = arith.select %3, %4, %5 : vector<4x16xi1>, vector<4x16xf32>
    %7 = vector.shape_cast %6 : vector<4x16xf32> to vector<4x1x16xf32>
    %8 = vector.shape_cast %7 : vector<4x1x16xf32> to vector<4x1x16xf32>
    %9 = vector.broadcast %8 : vector<4x1x16xf32> to vector<4x16x16xf32>
    %c0_4 = arith.constant 0 : index
    %c0_5 = arith.constant 0 : index
    %c0_6 = arith.constant 0 : index
    %10 = vector.load %arg2[%c0_4, %c0_5, %c0_6] : memref<4x16x16xf32, #tpu.memory_space<vmem>>, vector<4x16x16xf32>
    tpu.vector_store %arg2[%c0_4, %c0_5, %c0_6], %9 {strides = array<i32>} : memref<4x16x16xf32, #tpu.memory_space<vmem>>, vector<4x16x16xf32>,
    return
  }
  func.func @transform_0(%arg0: i32) -> (i32, i32, i32) {
    %c0_i32 = arith.constant 0 : i32
    %c0_i32_0 = arith.constant 0 : i32
    %c0_i32_1 = arith.constant 0 : i32
    return %arg0, %c0_i32, %c0_i32_0 : i32, i32, i32
  }
  func.func @transform_1(%arg0: i32) -> (i32, i32, i32) {
    %c0_i32 = arith.constant 0 : i32
    %c0_i32_0 = arith.constant 0 : i32
    %c0_i32_1 = arith.constant 0 : i32
    return %arg0, %c0_i32, %c0_i32_0 : i32, i32, i32
  }
}

</mosaic_0001>

<bundles_post_ra>
// kernel: _lambda_.4
= control target key start
LH: loop header
LB: loop body
LE: loop exit
PB: predicated region body
PF: predicated region fallthrough
CT: control target
= control target key end

     0   :  { %vm62_vm0 = vcmask 261120   ;;  %vm68_vm1 = vcmask 257024   ;;  %s172_s0 = inlined_call_operand.vmem [shape: f32[4,16,32], index: 0, kind: input, shape index: {}, may-alias: {0,2}]   ;;  %s173_s1 = inlined_call_operand.vmem [shape: f32[4,32], index: 1, kind: input, shape index: {}]   ;;  %s174_s2 = inlined_call_operand.vmem [shape: f32[4,16,32], index: 2, kind: output, shape index: {}, may-alias: {0,2}]  }
   0x1   :  { %v43_v0 = vld [vmem:[%s172_s0] sm:$0xff]  ;;  %v45_v1 = vld [vmem:[%s172_s0 + $0x10] sm:$0xff] }
   0x2   :  { %v47_v2 = vld [vmem:[%s172_s0 + $0x20] sm:$0xff]  ;;  %63 = vst.msk [vmem:[#allocation3] sm:$0xff] %vm62_vm0, %v43_v0  ;;  %64 = vst.msk [vmem:[#allocation3 + $0x8] sm:$0xff] %vm62_vm0, %v45_v1  ;;  %v49_v3 = vld [vmem:[%s172_s0 + $0x30] sm:$0xff] }
   0x3   :  { %65 = vst.msk [vmem:[#allocation3 + $0x10] sm:$0xff] %vm62_vm0, %v47_v2  ;;  %v67_v4 = vld [vmem:[%s173_s1] sm:$0xf]  ;;  %66 = vst.msk [vmem:[#allocation3 + $0x18] sm:$0xff] %vm62_vm0, %v49_v3 }
   0x4   :  { %69 = vst.msk [vmem:[#allocation3 + $0x1] sm:$0xf] %vm68_vm1, %v67_v4  ;;  %70 = vst.msk [vmem:[#allocation3 + $0x9] sm:$0xf] %vm68_vm1, %v67_v4 }
   0x5   :  { %71 = vst.msk [vmem:[#allocation3 + $0x11] sm:$0xf] %vm68_vm1, %v67_v4  ;;  %72 = vst.msk [vmem:[#allocation3 + $0x19] sm:$0xf] %vm68_vm1, %v67_v4 }
   0xb   :  { %v109_v5 = vld [vmem:[#allocation3] sm:$0xff]  ;;  %v111_v6 = vld [vmem:[#allocation3 + $0x8] sm:$0xff] }
   0xc   :  { %v113_v7 = vld [vmem:[#allocation3 + $0x10] sm:$0xff]  ;;  %110 = vst [vmem:[%s174_s2] sm:$0xff] %v109_v5  ;;  %112 = vst [vmem:[%s174_s2 + $0x10] sm:$0xff] %v111_v6  ;;  %v115_v8 = vld [vmem:[#allocation3 + $0x18] sm:$0xff] }
   0xd   :  { %114 = vst [vmem:[%s174_s2 + $0x20] sm:$0xff] %v113_v7  ;;  %116 = vst [vmem:[%s174_s2 + $0x30] sm:$0xff] %v115_v8 }

// kernel: _lambda_.5
= control target key start
LH: loop header
LB: loop body
LE: loop exit
PB: predicated region body
PF: predicated region fallthrough
CT: control target
= control target key end

     0   :  { %s566_s12 = smov 0   ;;  %s568_s13 = smov 0   ;;  %s626_s0 = inlined_call_operand.vmem [shape: f32[4,2,16,32], index: 0, kind: input, shape index: {}]   ;;  %s627_s1 = inlined_call_operand.vmem [shape: bf16[32,32], index: 1, kind: input, shape index: {}]   ;;  %s628_s2 = inlined_call_operand.vmem [shape: f32[1,32], index: 2, kind: input, shape index: {}]   ;;  %s629_s3 = inlined_call_operand.vmem [shape: f32[2,4,16,32], index: 3, kind: output, shape index: {}]  }
   0x1   :  { %s570_s14 = smov 0   ;;  %s572_s15 = smov 0  }
   0x2   :  { %s574_s16 = smov 0  }
   0x3 LB: > { %s28_s17 = sadd.s32 1, %s534_s14  ;;  %s32_s18 = sadd.s32 1, %s538_s15  ;;  %s542_s16 = sphi %s574_s16, %s13_s16   ;;  %s538_s15 = sphi %s572_s15, %s633_s15   ;;  %s534_s14 = sphi %s570_s14, %s632_s14   ;;  %s530_s13 = sphi %s568_s13, %s631_s13   ;;  %s526_s12 = sphi %s566_s12, %s630_s12  }
   0x4   : > { %p30_p0 = scmp.ge.s32.totalorder %s28_s17, 4  ;;  %p436_p1 = scmp.ge.s32.totalorder %s542_s16, 1 }
   0x5   : > { %p173_p2 = scmp.lt.s32.totalorder %s542_s16, 9 }
   0x6   : > { %s635_s17 = smov (%p30_p0, %s28_s17), 0  ;;  %s637_s18 = smov (!%p30_p0, %s32_s18), %s538_s15 }
   0x7   : > { %p174_p3 = pnand %p436_p1, %p173_p2  ;;  %p34_p4 = scmp.ge.s32.totalorder %s637_s18, 2 }
   0x8   : > { %p214_p5 = scmp.lt.s32.totalorder (!%p174_p3), %s526_s12, 3  ;;  %p216_p6 = scmp.lt.s32.totalorder (!%p174_p3), %s530_s13, 1 }
   0x9   : > { %s639_s18 = smov (%p34_p4, %s637_s18), 0  ;;  %177 = sbr.rel (%p174_p3) target bundleno = 225 (0xe1), region = 32 }
   0xe   : > { %v502_v0 = vld [vmem:[%s627_s1 + $0x8] sm:$0xff]   ;;  %v544_v1 = vmov 0.0   ;;  %v503_v2 = vld [vmem:[%s627_s1] sm:$0xff]   ;;  %vm545_vm0 = vmmov 0   ;;  %s641_s12 = smov (!%p214_p5, %s526_s12), 3  ;;  %s643_s13 = smov (!%p216_p6, %s530_s13), 1 }
   0xf   : > { %452 = vmatprep.subr.bf16.mxu0 %v544_v1  ;;  %456 = vmatprep.mubr.msk.bf16.mxu0 %vm545_vm0, %v544_v1  ;;  %s438_s23 = sshll.u32 %s641_s12, 2  ;;  %s440_s24 = sshll.u32 %s641_s12, 1  ;;  %vm268_vm1 = vcmask 261120   ;;  %v443_v6 = vld [vmem:[%s628_s2] ss:$0 sm:$0xff] }
  0x10   : > { %453 = vmatpush3.bf16.msra.mxu0 %v502_v0  ;;  %s437_s25 = sshll.u32 %s643_s13, 1  ;;  %s441_s26 = sshll.u32 %s643_s13, 3 }
  0x11   : > { %454 = vmatprep.subr.bf16.mxu0 %v544_v1  ;;  %s223_s27 = sadd.s32 %s438_s23, %s437_s25  ;;  %s237_s28 = sadd.s32 %s441_s26, %s440_s24 }
  0x12   : > { %s439_s29 = sshll.u32 %s223_s27, 3  ;;  %s442_s8 = sshll.u32 %s237_s28, 3 }
  0x13   : > { %s225_s5 = scalar_lea.vmem %s626_s0, %s439_s29  ;;  %s239_s11 = scalar_lea.vmem %s629_s3, %s442_s8 }
  0x14   : > { %455 = vmatpush3.bf16.msra.mxu0 %v503_v2  ;;  %v242_v3 = vld [vmem:[%s225_s5] sm:$0xff]  ;;  %v243_v4 = vld [vmem:[%s225_s5 + $0x8] sm:$0xff] }
  0x15   : > { %v244_v5 = vpack.c.bf16 %v243_v4, %v242_v3 }
  0x17   : > { %457 = vmatmul.mubr.msk.bf16.vlgmr.msra.gmra.mxu0 %vm268_vm1, %v244_v5 }
  0xd7   : > { %v306_v7 = vpop.f32.mrf.mxu0 }
  0xd8   : > { %v307_v8 = vadd.f32 %v443_v6, %v306_v7 }
  0xd9   : > { %v458_v9 = vpop.f32.mrf.mxu0 }
  0xda   : > { %v313_v10 = vadd.f32 %v307_v8, %v242_v3 }
  0xdb   : > { %v309_v11 = vpop.f32.mrf.mxu0 }
  0xdc   : > { %315 = vst.msk [vmem:[%s239_s11] sm:$0xff] %vm268_vm1, %v313_v10  ;;  %v310_v12 = vadd.f32 %v443_v6, %v309_v11 }
  0xdd   : > { %v459_v13 = vpop.f32.mrf.mxu0 }
  0xde   : > { %v314_v14 = vadd.f32 %v310_v12, %v243_v4 }
  0xe0   : > { %316 = vst.msk [vmem:[%s239_s11 + $0x8] sm:$0xff] %vm268_vm1, %v314_v14 }
  0xe1 PF: > { %s13_s16 = sadd.s32 1, %s542_s16   ;;  %s630_s12 = smov %s534_s14 }
  0xe2   : > { %p10_p7 = scmp.ge.s32.totalorder %s13_s16, 10   ;;  %s631_s13 = smov %s538_s15 }
  0xe3   : > { %s632_s14 = smov %s635_s17  ;;  %s633_s15 = smov %s639_s18 }
  0xe4   :  { %12 = sbr.rel (!%p10_p7) target bundleno = 3 (0x3), region = 62 }

// kernel: _lambda_.3
= control target key start
LH: loop header
LB: loop body
LE: loop exit
PB: predicated region body
PF: predicated region fallthrough
CT: control target
= control target key end

     0   :  { %v25_v1 = vlaneseq  ;;  %s96_s14 = smov [#allocation2]   ;;  %v97_v6 = vmov -3.4028235e+38   ;;  %s125_s0 = inlined_call_operand.vmem [shape: f32[4,1,16], index: 0, kind: input, shape index: {}]   ;;  %s126_s1 = inlined_call_operand.hbm [shape: f32[4,16,16], index: 1, kind: output, shape index: {}]  }
   0x1   :  { %v9_v0 = vld [vmem:[%s125_s0] sm:$0x1]  ;;  %v10_v2 = vld [vmem:[%s125_s0 + $0x1] sm:$0x1]  ;;  %v11_v3 = vld [vmem:[%s125_s0 + $0x2] sm:$0x1] }
   0x2   :  { %vm13_vm0 = vcmp.gt.f32.partialorder %v9_v0, 0.5  ;;  %v26_v4 = vshrl.u32 %v25_v1, 7  ;;  %vm14_vm1 = vcmp.gt.f32.partialorder %v10_v2, 0.5  ;;  %vm15_vm2 = vcmp.gt.f32.partialorder %v11_v3, 0.5  ;;  %v12_v5 = vld [vmem:[%s125_s0 + $0x3] sm:$0x1] }
   0x3   :  { %s59_s15 = sshll.u32 %s96_s14, 4  ;;  %v17_v7 = vsel %vm13_vm0, 0.0, %v97_v6  ;;  %v18_v8 = vsel %vm14_vm1, 0.0, %v97_v6  ;;  %v19_v9 = vsel %vm15_vm2, 0.0, %v97_v6  ;;  %vm16_vm3 = vcmp.gt.f32.partialorder %v12_v5, 0.5  ;;  %s60_s15 = int_to_ptr.vmem [resolvable:$true] %s59_s15 }
   0x4   :  { %6 = vsyncpa [#allocation3], 0  ;;  %v27_v10 = vsub.s32 0, %v26_v4  ;;  %v20_v11 = vsel %vm16_vm3, 0.0, %v97_v6  ;;  %vm45_vm4 = vcmask 130048   ;;  %s74_s0 = scalar_lea.vmem %s60_s15, 1024  ;;  %p79_p1 = scmp.lt.s32.totalorder %s60_s15, %s60_s15 }
   0x5   :  { %p75_p0 = scmp.ne.s32.totalorder %s60_s15, %s74_s0  ;;  %p80_p2 = scmp.lt.s32.totalorder %s74_s0, %s74_s0 }
   0x6   :  { %v28_v12 = vrot.slane %v17_v7, %v27_v10  ;;  %v32_v13 = vrot.slane %v18_v8, %v27_v10  ;;  %v36_v14 = vrot.slane %v19_v9, %v27_v10  ;;  %v40_v15 = vrot.slane %v20_v11, %v27_v10 }
   0x7   :  { %p81_p3 = por %p80_p2, %p79_p1 }
   0x8   :  { %46 = vst.msk [vmem:[#allocation2] sm:$0xff] %vm45_vm4, %v28_v12  ;;  %47 = vst.msk [vmem:[#allocation2 + $0x8] sm:$0xff] %vm45_vm4, %v28_v12 }
   0x9   :  { %48 = vst.msk [vmem:[#allocation2 + $0x10] sm:$0xff] %vm45_vm4, %v32_v13  ;;  %49 = vst.msk [vmem:[#allocation2 + $0x18] sm:$0xff] %vm45_vm4, %v32_v13  ;;  %p82_p4 = pnand %p81_p3, %p75_p0 }
   0xa   :  { %50 = vst.msk [vmem:[#allocation2 + $0x20] sm:$0xff] %vm45_vm4, %v36_v14  ;;  %51 = vst.msk [vmem:[#allocation2 + $0x28] sm:$0xff] %vm45_vm4, %v36_v14 }
   0xb   :  { %52 = vst.msk [vmem:[#allocation2 + $0x30] sm:$0xff] %vm45_vm4, %v40_v15  ;;  %53 = vst.msk [vmem:[#allocation2 + $0x38] sm:$0xff] %vm45_vm4, %v40_v15 }
   0xc   :  { %85 = shalt.err (!%p82_p4)
}
   0xd   :  { %s98_s16 = smov 128   ;;  %s99_s17 = smov 8  }
   0xe   :  { %65 = dma.vmem_to_hbm [thread:$0]  %s60_s15, 1024, %s126_s1, [#allocation3], %s98_s16, %s98_s16, %s99_s17  }
   0xf   :  { %94 = dma.done.wait [#allocation3], 1024  }
  0x10   :  { %95 = vsyncadd [#allocation3], 4294966272 }
  0x11   :  { %69 = vsyncpa [#allocation3], 1 }

</bundles_post_ra>
